<compile_context>
chip_gen: v5e
topology: v5e:2x2
jax: 0.10.0
libtpu: 0.0.40
codegen_flags: <defaults>
</compile_context>

<pallas_src>
import functools

import jax
import jax.numpy as jnp
from jax import lax
from jax.experimental import pallas as pl
from jax.experimental.pallas import tpu as pltpu


def _round_up(v, m):
    return (v + m - 1) // m * m


def _vmem_budget_bytes():
    """Generation-aware VMEM budget with headroom for compiler scratch."""
    cap = 64 * 1024 * 1024  # safe default (v7x has only 64 MiB per TensorCore)
    try:
        info = pltpu.get_tpu_info()
        cap = int(getattr(info, "vmem_capacity_bytes", cap)) or cap
    except Exception:
        pass
    return (cap * 3) // 4  # ~48 MiB on v7x, ~96 MiB on v5e/v6e


def _choose_batch_per_tile(n, bytes_per_image, budget_bytes, rows_per_image,
                           max_rows_per_tile):
    """Largest divisor of n whose tile fits the VMEM budget.

    Keeps >= 2 grid tiles whenever n >= 2 so the 'parallel' grid axis can be
    split across both TensorCores on v7x (and never degenerates to one giant
    full-batch tile on v5e/v6e).
    """
    cap = n if n == 1 else n // 2
    best = 1
    for bpt in range(1, cap + 1):
        if n % bpt:
            continue
        if bpt * bytes_per_image > budget_bytes:
            continue
        if bpt * rows_per_image > max_rows_per_tile:
            continue
        best = bpt
    # TODO(synk): sub-image spatial tiling (masked partial pool) for inputs so
    #             large that even bpt=1 exceeds the VMEM budget.
    return best


def _resnet_fused_kernel(patches_ref, wconv_ref, shift_ref, wfc_ref, bfc_ref,
                         out_ref, *, ohw_valid):
    """One batch-tile (bpt whole images) of the fused forward pass."""
    bpt, ohw_pad, k_pad = patches_ref.shape
    oc = wconv_ref.shape[1]

    # Conv2d as a single im2col matmul on the MXU (bf16 in, f32 accumulate).
    # The BN(eval) per-channel scale is already folded into wconv.
    p = patches_ref[...].reshape(bpt * ohw_pad, k_pad)
    feat = jnp.dot(p, wconv_ref[...], preferred_element_type=jnp.float32)

    # conv bias + BatchNorm shift, then ReLU.
    feat = jnp.maximum(feat + shift_ref[...], 0.0)
    feat = feat.reshape(bpt, ohw_pad, oc)

    if ohw_pad != ohw_valid:
        # Padded (all-zero) spatial rows would otherwise contribute
        # ReLU(shift); mask them out before the pool sum.
        row = lax.broadcasted_iota(jnp.int32, (bpt, ohw_pad, oc), 1)
        feat = jnp.where(row < ohw_valid, feat, 0.0)

    # AdaptiveAvgPool2d((1,1)): f32 sublane-sum per image; the 1/OHW factor is
    # folded into the FC weight so no extra multiply is needed here.
    pooled = jnp.sum(feat, axis=1)                              # (bpt, oc) f32

    # Flatten + Linear(64, num_classes) (classes zero-padded to 128 lanes).
    logits = jnp.dot(pooled, wfc_ref[...],
                     preferred_element_type=jnp.float32) + bfc_ref[...]
    out_ref[...] = logits[None].astype(out_ref.dtype)


def optimized_resnet_forward(x, params, *, stride=2, pad=3, eps=1e-5,
                             max_rows_per_tile=32768):
    """x: (N, 3, H, W) float32, NCHW (PyTorch convention)."""
    wc = params["conv_w"]          # (64, 3, 7, 7)  OIHW
    bc = params["conv_b"]          # (64,)
    gamma = params["bn_gamma"]     # (64,)
    beta = params["bn_beta"]       # (64,)
    mean = params["bn_mean"]       # (64,)
    var = params["bn_var"]         # (64,)
    wfc = params["fc_w"]           # (num_classes, 64)
    bfc = params["fc_b"]           # (num_classes,)

    N, C, H, W = x.shape
    OC, _, KH, KW = wc.shape
    OH = (H + 2 * pad - KH) // stride + 1
    OW = (W + 2 * pad - KW) // stride + 1
    OHW = OH * OW
    K = C * KH * KW
    num_classes = wfc.shape[0]

    K_pad = _round_up(K, 128)                 # lane-aligned contracting dim
    NC_pad = _round_up(num_classes, 128)      # lane-dense output
    OHW_pad = _round_up(OHW, 8)               # sublane-aligned rows per image

    # ---- glue: im2col as pure bf16 data movement (no eye-filter conv) -------
    # column ordering k = c*KH*KW + i*KW + j matches wc.reshape(OC, K).
    xp = jnp.pad(x, ((0, 0), (0, 0), (pad, pad), (pad, pad))).astype(jnp.bfloat16)
    taps = []
    for i in range(KH):
        for j in range(KW):
            taps.append(lax.slice(
                xp, (0, 0, i, j),
                (N, C, i + stride * (OH - 1) + 1, j + stride * (OW - 1) + 1),
                (1, 1, stride, stride)))                    # (N, C, OH, OW)
    patches = jnp.stack(taps, axis=2)                       # (N, C, KH*KW, OH, OW)
    patches = patches.transpose(0, 3, 4, 1, 2).reshape(N, OHW, K)
    patches = jnp.pad(patches, ((0, 0), (0, OHW_pad - OHW), (0, K_pad - K)))

    # ---- fold conv bias + BN(eval) into the conv weights / a shift ----------
    inv_std = 1.0 / jnp.sqrt(var + eps)
    scale = gamma * inv_std                                  # (64,)
    wconv = wc.reshape(OC, K).T * scale[None, :]             # (K, 64), scaled
    wconv = jnp.pad(wconv, ((0, K_pad - K), (0, 0))).astype(jnp.bfloat16)
    shift = (beta + (bc - mean) * scale).reshape(1, OC).astype(jnp.float32)

    # FC weight with 1/OHW (avg-pool) folded in; kept f32 (tiny).
    wfc_t = jnp.pad(wfc.T / OHW, ((0, 0), (0, NC_pad - num_classes)))
    wfc_t = wfc_t.astype(jnp.float32)                        # (64, NC_pad)
    bfc_p = jnp.pad(bfc, (0, NC_pad - num_classes)).reshape(1, NC_pad)
    bfc_p = bfc_p.astype(jnp.float32)

    # ---- tiling: whole images per tile, VMEM- and megacore-aware ------------
    budget = _vmem_budget_bytes()
    # per-image working bytes: double-buffered bf16 patch tile + f32 feat.
    per_img = OHW_pad * (2 * 2 * K_pad + 2 * 4 * OC)
    bpt = _choose_batch_per_tile(N, per_img, budget // 2, OHW_pad,
                                 max_rows_per_tile)
    num_tiles = N // bpt

    const_bytes = (K_pad * OC * 2 + OC * 4 + OC * NC_pad * 4 + NC_pad * 4)
    need = bpt * per_img + 2 * const_bytes + 2 * bpt * NC_pad * 4 + (4 << 20)
    vmem_limit = int(min(budget, max(16 << 20, need)))

    flops = (2 * N * OHW_pad * K_pad * OC     # conv matmul
             + 2 * N * OHW_pad * OC           # shift + relu
             + 2 * N * OC * NC_pad)           # fc matmul
    bytes_accessed = (N * OHW_pad * K_pad * 2 + const_bytes + N * NC_pad * 4)

    kernel = functools.partial(_resnet_fused_kernel, ohw_valid=OHW)

    out_padded = pl.pallas_call(
        kernel,
        out_shape=jax.ShapeDtypeStruct((num_tiles, bpt, NC_pad), jnp.float32),
        grid=(num_tiles,),
        in_specs=[
            pl.BlockSpec((bpt, OHW_pad, K_pad), lambda t: (t, 0, 0)),  # patches
            pl.BlockSpec((K_pad, OC), lambda t: (0, 0)),               # conv w
            pl.BlockSpec((1, OC), lambda t: (0, 0)),                   # BN shift
            pl.BlockSpec((OC, NC_pad), lambda t: (0, 0)),              # FC w
            pl.BlockSpec((1, NC_pad), lambda t: (0, 0)),               # FC bias
        ],
        out_specs=pl.BlockSpec((1, bpt, NC_pad), lambda t: (t, 0, 0)),
        compiler_params=pltpu.CompilerParams(
            dimension_semantics=("parallel",),
            vmem_limit_bytes=vmem_limit),
        cost_estimate=pl.CostEstimate(
            flops=flops, transcendentals=0, bytes_accessed=bytes_accessed),
    )(patches, wconv, shift, wfc_t, bfc_p)

    return out_padded.reshape(N, NC_pad)[:, :num_classes]


def reference_forward(x, params, *, eps=1e-5):
    """Pure-JAX reference of the PyTorch forward (eval-mode BN), f32."""
    y = lax.conv_general_dilated(
        x, params["conv_w"], window_strides=(2, 2),
        padding=((3, 3), (3, 3)),
        dimension_numbers=("NCHW", "OIHW", "NCHW"))
    y = y + params["conv_b"][None, :, None, None]
    y = (y - params["bn_mean"][None, :, None, None]) / \
        jnp.sqrt(params["bn_var"] + eps)[None, :, None, None]
    y = y * params["bn_gamma"][None, :, None, None] + \
        params["bn_beta"][None, :, None, None]
    y = jnp.maximum(y, 0.0)
    y = y.mean(axis=(2, 3))                                   # (N, 64)
    return y @ params["fc_w"].T + params["fc_b"][None, :]


def init_params(key, num_classes=16):
    ks = jax.random.split(key, 8)
    return {
        "conv_w": jax.random.normal(ks[0], (64, 3, 7, 7), jnp.float32) * 0.05,
        "conv_b": jax.random.normal(ks[1], (64,), jnp.float32) * 0.05,
        "bn_gamma": 1.0 + 0.1 * jax.random.normal(ks[2], (64,), jnp.float32),
        "bn_beta": 0.1 * jax.random.normal(ks[3], (64,), jnp.float32),
        "bn_mean": 0.1 * jax.random.normal(ks[4], (64,), jnp.float32),
        "bn_var": 0.5 + jax.random.uniform(ks[5], (64,), jnp.float32),
        "fc_w": jax.random.normal(ks[6], (num_classes, 64), jnp.float32) * 0.05,
        "fc_b": jax.random.normal(ks[7], (num_classes,), jnp.float32) * 0.05,
    }


if __name__ == "__main__":
    key = jax.random.PRNGKey(0)
    kp, kx = jax.random.split(key)
    num_classes = 16                      # config = {'num_classes': 16}
    params = init_params(kp, num_classes=num_classes)
    x = jax.random.normal(kx, (2, 3, 16, 16), jnp.float32)   # NCHW, small

    out = optimized_resnet_forward(x, params)
    out = jax.block_until_ready(out)

    ref = jax.block_until_ready(reference_forward(x, params))
    assert out.shape == (2, num_classes), out.shape
    assert jnp.allclose(out, ref, rtol=2e-2, atol=2e-2), \
        f"max abs err {jnp.max(jnp.abs(out - ref))}"

    print("KERNEL_OK")
</pallas_src>

<mosaic_0001>
module attributes {stable_mosaic.version = 11 : i64} {
  func.func @_resnet_fused_kernel(%arg0: i32, %arg1: memref<1x64x256xbf16, #tpu.memory_space<vmem>>, %arg2: memref<256x64xbf16, #tpu.memory_space<vmem>>, %arg3: memref<1x64xf32, #tpu.memory_space<vmem>>, %arg4: memref<64x128xf32, #tpu.memory_space<vmem>>, %arg5: memref<1x128xf32, #tpu.memory_space<vmem>>, %arg6: memref<1x1x128xf32, #tpu.memory_space<vmem>>) attributes {dimension_semantics = [#tpu.dimension_semantics<parallel>], iteration_bounds = array<i64: 2>, scalar_prefetch = 0 : i64, scratch_operands = 0 : i64, tpu.core_type = #tpu.core_type<tc>, window_params = [{transform_indices = @transform_0, window_bounds = array<i64: 1, 64, 256>}, {pipeline_mode = #tpu.pipeline_mode<synchronous>, transform_indices = @transform_1, window_bounds = array<i64: 256, 64>}, {pipeline_mode = #tpu.pipeline_mode<synchronous>, transform_indices = @transform_2, window_bounds = array<i64: 1, 64>}, {pipeline_mode = #tpu.pipeline_mode<synchronous>, transform_indices = @transform_3, window_bounds = array<i64: 64, 128>}, {pipeline_mode = #tpu.pipeline_mode<synchronous>, transform_indices = @transform_4, window_bounds = array<i64: 1, 128>}, {transform_indices = @transform_5, window_bounds = array<i64: 1, 1, 128>}]} {
    %c0 = arith.constant 0 : index
    %c0_0 = arith.constant 0 : index
    %c0_1 = arith.constant 0 : index
    %0 = vector.load %arg1[%c0, %c0_0, %c0_1] : memref<1x64x256xbf16, #tpu.memory_space<vmem>>, vector<1x64x256xbf16>
    %1 = vector.shape_cast %0 : vector<1x64x256xbf16> to vector<64x256xbf16>
    %c0_2 = arith.constant 0 : index
    %c0_3 = arith.constant 0 : index
    %2 = vector.load %arg2[%c0_2, %c0_3] : memref<256x64xbf16, #tpu.memory_space<vmem>>, vector<256x64xbf16>
    %cst = arith.constant dense<0.000000e+00> : vector<64x64xf32>
    %3 = tpu.matmul %1, %2, %cst {dimension_numbers = #tpu.dot_dimension_numbers<[1], [0], [0], [1], [0, 0, 1, 1], [], []>} : vector<64x256xbf16>, vector<256x64xbf16>, vector<64x64xf32> -> vector<64x64xf32>
    %c0_4 = arith.constant 0 : index
    %c0_5 = arith.constant 0 : index
    %4 = vector.load %arg3[%c0_4, %c0_5] : memref<1x64xf32, #tpu.memory_space<vmem>>, vector<1x64xf32>
    %5 = vector.broadcast %4 : vector<1x64xf32> to vector<64x64xf32>
    %6 = arith.addf %3, %5 : vector<64x64xf32>
    %cst_6 = arith.constant 0.000000e+00 : f32
    %7 = vector.broadcast %cst_6 : f32 to vector<64x64xf32>
    %8 = arith.maximumf %6, %7 : vector<64x64xf32>
    %9 = vector.shape_cast %8 : vector<64x64xf32> to vector<1x64x64xf32>
    %cst_7 = arith.constant dense<0.000000e+00> : vector<1x64xf32>
    %10 = vector.multi_reduction <add>, %9, %cst_7 [1] : vector<1x64x64xf32> to vector<1x64xf32>
    %c0_8 = arith.constant 0 : index
    %c0_9 = arith.constant 0 : index
    %11 = vector.load %arg4[%c0_8, %c0_9] : memref<64x128xf32, #tpu.memory_space<vmem>>, vector<64x128xf32>
    %cst_10 = arith.constant dense<0.000000e+00> : vector<1x128xf32>
    %12 = tpu.matmul %10, %11, %cst_10 {dimension_numbers = #tpu.dot_dimension_numbers<[1], [0], [0], [1], [0, 0, 1, 1], [], []>} : vector<1x64xf32>, vector<64x128xf32>, vector<1x128xf32> -> vector<1x128xf32>
    %c0_11 = arith.constant 0 : index
    %c0_12 = arith.constant 0 : index
    %13 = vector.load %arg5[%c0_11, %c0_12] : memref<1x128xf32, #tpu.memory_space<vmem>>, vector<1x128xf32>
    %14 = arith.addf %12, %13 : vector<1x128xf32>
    %15 = vector.shape_cast %14 : vector<1x128xf32> to vector<1x1x128xf32>
    %c0_13 = arith.constant 0 : index
    %c0_14 = arith.constant 0 : index
    %c0_15 = arith.constant 0 : index
    %16 = vector.load %arg6[%c0_13, %c0_14, %c0_15] : memref<1x1x128xf32, #tpu.memory_space<vmem>>, vector<1x1x128xf32>
    tpu.vector_store %arg6[%c0_13, %c0_14, %c0_15], %15 {strides = array<i32>} : memref<1x1x128xf32, #tpu.memory_space<vmem>>, vector<1x1x128xf32>,
    return
  }
  func.func @transform_0(%arg0: i32) -> (i32, i32, i32) {
    %c0_i32 = arith.constant 0 : i32
    %c0_i32_0 = arith.constant 0 : i32
    %c0_i32_1 = arith.constant 0 : i32
    return %arg0, %c0_i32, %c0_i32_0 : i32, i32, i32
  }
  func.func @transform_1(%arg0: i32) -> (i32, i32) {
    %c0_i32 = arith.constant 0 : i32
    %c0_i32_0 = arith.constant 0 : i32
    %c0_i32_1 = arith.constant 0 : i32
    return %c0_i32, %c0_i32_0 : i32, i32
  }
  func.func @transform_2(%arg0: i32) -> (i32, i32) {
    %c0_i32 = arith.constant 0 : i32
    %c0_i32_0 = arith.constant 0 : i32
    %c0_i32_1 = arith.constant 0 : i32
    return %c0_i32, %c0_i32_0 : i32, i32
  }
  func.func @transform_3(%arg0: i32) -> (i32, i32) {
    %c0_i32 = arith.constant 0 : i32
    %c0_i32_0 = arith.constant 0 : i32
    %c0_i32_1 = arith.constant 0 : i32
    return %c0_i32, %c0_i32_0 : i32, i32
  }
  func.func @transform_4(%arg0: i32) -> (i32, i32) {
    %c0_i32 = arith.constant 0 : i32
    %c0_i32_0 = arith.constant 0 : i32
    %c0_i32_1 = arith.constant 0 : i32
    return %c0_i32, %c0_i32_0 : i32, i32
  }
  func.func @transform_5(%arg0: i32) -> (i32, i32, i32) {
    %c0_i32 = arith.constant 0 : i32
    %c0_i32_0 = arith.constant 0 : i32
    %c0_i32_1 = arith.constant 0 : i32
    return %arg0, %c0_i32, %c0_i32_0 : i32, i32, i32
  }
}

</mosaic_0001>

<bundles_post_ra>
// kernel: tpu_custom_call.1
= control target key start
LH: loop header
LB: loop body
LE: loop exit
PB: predicated region body
PF: predicated region fallthrough
CT: control target
= control target key end

     0   :  { %10 = vsyncpa [#allocation3], 0  ;;  %s1137_s0 = inlined_call_operand.vmem [shape: bf16[2,64,256], index: 0, kind: input, shape index: {}]   ;;  %s1138_s1 = inlined_call_operand.vmem [shape: bf16[256,64], index: 1, kind: input, shape index: {}]   ;;  %s1139_s2 = inlined_call_operand.hbm [shape: f32[1,64], index: 2, kind: input, shape index: {}]   ;;  %s1140_s3 = inlined_call_operand.vmem [shape: f32[64,128], index: 3, kind: input, shape index: {}]   ;;  %s1141_s4 = inlined_call_operand.vmem [shape: f32[1,128], index: 4, kind: input, shape index: {}]   ;;  %s1142_s5 = inlined_call_operand.hbm [shape: f32[2,1,128], index: 5, kind: output, shape index: {}]  }
   0x1   :  { %11 = vsyncpa [#allocation4], 0 }
   0x2   :  { %13 = vsyncpa [#allocation4 + $0x1], 0  ;;  %s946_s18 = smov 0   ;;  %s948_s19 = smov 0  }
   0x3   :  { %s950_s20 = smov 0   ;;  %s952_s21 = smov 0  }
   0x4 LB: > { %s967_s22 = sadd.s32 4294967295, %s913_s21   ;;  %s618_s23 = sadd.s32 4294967294, %s913_s21   ;;  %s913_s21 = sphi %s952_s21, %s1148_s21   ;;  %s909_s20 = sphi %s950_s20, %s1147_s20   ;;  %s905_s19 = sphi %s948_s19, %s1146_s19   ;;  %s901_s18 = sphi %s946_s18, %s1145_s18  }
   0x5   : > { %s971_s24 = sadd.s32 1, %s913_s21   ;;  %s136_s25 = sadd.s32 1, %s909_s20 }
   0x6   : > { %s133_s26 = ssub.s32 %s913_s21, %s971_s24  ;;  %p146_p0 = scmp.ne.s32.totalorder %s909_s20, %s905_s19 }
   0x7   : > { %p134_p1 = scmp.eq.s32.totalorder %s133_s26, 0  ;;  %p147_p2 = scmp.eq.s32.totalorder %s967_s22, 1 }
   0x8   : > { %p152_p3 = scmp.ne.s32.totalorder %s905_s19, %s901_s18  ;;  %p153_p4 = scmp.eq.s32.totalorder %s618_s23, 1 }
   0x9   : > { %s982_s27 = scalar_select %p134_p1, %s909_s20, %s136_s25  }
   0xa   : > { %p984_p5 = por %p147_p2, %p146_p0  ;;  %p988_p6 = por %p153_p4, %p152_p3 }
   0xb   : > { %p619_p7 = scmp.ge.s32.totalorder %s913_s21, 1  ;;  %p160_p8 = scmp.lt.s32.totalorder %s913_s21, 3 }
   0xc   : > { %p780_p9 = scmp.eq.s32.totalorder %s967_s22, 0  ;;  %s175_s7 = sshll.u32 %s1139_s2, 4  ;;  %s176_s7 = int_to_ptr.hbm [resolvable:$true] %s175_s7 }
   0xd   : > { %p161_p10 = pnand %p619_p7, %p160_p8  ;;  %s915_s8 = smov [#allocation2]  }
   0xe   : > { %s177_s9 = sshll.u32 %s915_s8, 4  ;;  %s178_s9 = int_to_ptr.vmem [resolvable:$true] %s177_s9 }
   0xf   : > { %p772_p11 = pneg %p161_p10  ;;  %204 = sbr.rel (%p161_p10) target bundleno = 380 (0x17c), region = 40 }
  0x11   : > { %p773_p12 = pnand %p780_p9, %p772_p11 }
  0x13   : > { %775 = dma.hbm_to_vmem [thread:$0]  (!%p773_p12), %s176_s7, 16, %s178_s9, [#allocation3]  }
  0x14   : > { %892 = dma.done.wait (%p780_p9), [#allocation3], 16  }
  0x15   : > { %894 = vsyncadd (%p780_p9), [#allocation3], 4294967280  ;;  %v741_v0 = vld [vmem:[%s1138_s1 + $0x38] sm:$0xff]  ;;  %v740_v2 = vld [vmem:[%s1138_s1 + $0x30] sm:$0xff]  ;;  %p232_p13 = scmp.lt.s32.totalorder %s967_s22, 1  ;;  %vm483_vm0 = vcmask 523264   ;;  %s547_s23 = scalar_lea.hbm %s1142_s5, %s967_s22 }
  0x16   : > { %v749_v1 = vld [vmem:[%s1138_s1 + $0x78] sm:$0xff]  ;;  %417 = vmatpush.bf16.msra.mxu0 %v741_v0  ;;  %v748_v3 = vld [vmem:[%s1138_s1 + $0x70] sm:$0xff]  ;;  %750 = vmatpush.bf16.msra.mxu3 %v741_v0  ;;  %v739_v4 = vld [vmem:[%s1138_s1 + $0x28] sm:$0xff]  ;;  %s230_s15 = sand.u32 1, %s905_s19   ;;  %s551_s7 = sshll.u32 %s547_s23, 4  ;;  %s552_s7 = int_to_ptr.hbm [resolvable:$true] %s551_s7 }
  0x17   : > { %446 = vmatpush.bf16.msra.mxu1 %v749_v1  ;;  %758 = vmatpush.bf16.msra.mxu2 %v749_v1  ;;  %v747_v5 = vld [vmem:[%s1138_s1 + $0x68] sm:$0xff]  ;;  %v738_v6 = vld [vmem:[%s1138_s1 + $0x20] sm:$0xff]  ;;  %v737_v8 = vld [vmem:[%s1138_s1 + $0x18] sm:$0xff]  ;;  %s233_s14 = scalar_select %p232_p13, %s967_s22, 1 }
  0x18   : > { %v746_v7 = vld [vmem:[%s1138_s1 + $0x60] sm:$0xff]  ;;  %v745_v9 = vld [vmem:[%s1138_s1 + $0x58] sm:$0xff]  ;;  %v736_v10 = vld [vmem:[%s1138_s1 + $0x10] sm:$0xff]  ;;  %s231_s30 = scalar_lea.vmem [#allocation5], %s230_s15  ;;  %s539_s8 = scalar_lea.sflag [#allocation4], %s230_s15 }
  0x19   : > { %v744_v11 = vld [vmem:[%s1138_s1 + $0x50] sm:$0xff]  ;;  %s725_s25 = sshll.u32 %s233_s14, 6  ;;  %v735_v12 = vld [vmem:[%s1138_s1 + $0x8] sm:$0xff]  ;;  %v734_v14 = vld [vmem:[%s1138_s1] sm:$0xff]  ;;  %s549_s6 = sshll.u32 %s231_s30, 4  ;;  %s550_s6 = int_to_ptr.vmem [resolvable:$true] %s549_s6 }
  0x1a   : > { %418 = vmatpush.bf16.msra.mxu0 %v740_v2  ;;  %751 = vmatpush.bf16.msra.mxu3 %v740_v2  ;;  %v743_v13 = vld [vmem:[%s1138_s1 + $0x48] sm:$0xff]  ;;  %s1045_s10 = scalar_lea.vmem %s1137_s0, %s725_s25  ;;  %v742_v15 = vld [vmem:[%s1138_s1 + $0x40] sm:$0xff]  ;;  %v512_v48 = vld [vmem:[%s1140_s3 + $0x38] sm:$0xff]  ;;  %s861_s9 = sshra.s32 %s552_s7, 4  ;;  %s862_s9 = int_to_ptr.hbm [resolvable:$true] %s861_s9 }
  0x1b   : > { %447 = vmatpush.bf16.msra.mxu1 %v748_v3  ;;  %759 = vmatpush.bf16.msra.mxu2 %v748_v3  ;;  %v628_v16 = vld [vmem:[%s1045_s10] sm:$0xf]  ;;  %v727_v17 = vld [vmem:[%s1045_s10 + $0x4] sm:$0xf0]  ;;  %v726_v18 = vld [vmem:[%s1045_s10 + $0x4] sm:$0xf]  ;;  %p868_p3 = scmp.lt.s32.totalorder %s862_s9, %s1142_s5 }
  0x1c   : > { %v630_v19 = vld [vmem:[%s1045_s10 + $0x8] sm:$0xf0]  ;;  %v644_v20 = vld [vmem:[%s1045_s10 + $0x20] sm:$0xf]  ;;  %v731_v21 = vld [vmem:[%s1045_s10 + $0x24] sm:$0xf0]  ;;  %v629_v24 = vor.u32 %v727_v17, %v628_v16 }
  0x1d   : > { %v732_v22 = vld [vmem:[%s1045_s10 + $0x34] sm:$0xf]  ;;  %v654_v23 = vld [vmem:[%s1045_s10 + $0x38] sm:$0xf0]  ;;  %v633_v25 = vor.u32 %v726_v18, %v630_v19  ;;  %v645_v26 = vor.u32 %v731_v21, %v644_v20  ;;  %v636_v28 = vld [vmem:[%s1045_s10 + $0x10] sm:$0xf] }
  0x1e   : > { %419 = vmatpush.bf16.msra.mxu0 %v739_v4  ;;  %752 = vmatpush.bf16.msra.mxu3 %v739_v4  ;;  %v657_v27 = vor.u32 %v732_v22, %v654_v23  ;;  %v729_v29 = vld [vmem:[%s1045_s10 + $0x14] sm:$0xf0]  ;;  %v728_v30 = vld [vmem:[%s1045_s10 + $0x14] sm:$0xf]  ;;  %v638_v31 = vld [vmem:[%s1045_s10 + $0x18] sm:$0xf0] }
  0x1f   : > { %448 = vmatpush.bf16.msra.mxu1 %v747_v5  ;;  %760 = vmatpush.bf16.msra.mxu2 %v747_v5  ;;  %v652_v32 = vld [vmem:[%s1045_s10 + $0x30] sm:$0xf]  ;;  %v733_v33 = vld [vmem:[%s1045_s10 + $0x34] sm:$0xf0]  ;;  %v637_v34 = vor.u32 %v729_v29, %v636_v28  ;;  %v641_v35 = vor.u32 %v728_v30, %v638_v31  ;;  %v730_v37 = vld [vmem:[%s1045_s10 + $0x24] sm:$0xf] }
  0x20   : > { %v653_v36 = vor.u32 %v733_v33, %v652_v32  ;;  %v646_v38 = vld [vmem:[%s1045_s10 + $0x28] sm:$0xf0]  ;;  %v511_v49 = vld [vmem:[%s1140_s3 + $0x30] sm:$0xff]  ;;  %v816_v51 = vld [vmem:[#allocation2] ss:$0 sm:$0xff]  ;;  %s863_s10 = scalar_lea.hbm %s862_s9, 1 }
  0x21   : > { %v649_v39 = vor.u32 %v730_v37, %v646_v38  ;;  %v510_v50 = vld [vmem:[%s1140_s3 + $0x28] sm:$0xff]  ;;  %v509_v52 = vld [vmem:[%s1140_s3 + $0x20] sm:$0xff]  ;;  %v508_v53 = vld [vmem:[%s1140_s3 + $0x18] sm:$0xff]  ;;  %p864_p0 = scmp.ne.s32.totalorder %s862_s9, %s863_s10  ;;  %s867_s12 = scalar_lea.hbm %s1142_s5, 2 }
  0x22   : > { %420 = vmatpush.bf16.msra.mxu0 %v738_v6  ;;  %753 = vmatpush.bf16.msra.mxu3 %v738_v6  ;;  %v507_v58 = vld [vmem:[%s1140_s3 + $0x10] sm:$0xff]  ;;  %v506_v61 = vld [vmem:[%s1140_s3 + $0x8] sm:$0xff]  ;;  %v505_v1 = vld [vmem:[%s1140_s3] sm:$0xff]  ;;  %p869_p4 = scmp.lt.s32.totalorder %s867_s12, %s863_s10 }
  0x23   : > { %449 = vmatpush.bf16.msra.mxu1 %v746_v7  ;;  %761 = vmatpush.bf16.msra.mxu2 %v746_v7  ;;  %p865_p1 = pnand %p864_p0, %p984_p5 }
  0x24   : > { %p870_p7 = por %p869_p4, %p868_p3 }
  0x25   : > { %p866_p2 = pneg %p865_p1 }
  0x26   : > { %421 = vmatpush.bf16.msra.mxu0 %v737_v8  ;;  %754 = vmatpush.bf16.msra.mxu3 %v737_v8 }
  0x27   : > { %450 = vmatpush.bf16.msra.mxu1 %v745_v9  ;;  %762 = vmatpush.bf16.msra.mxu2 %v745_v9  ;;  %p871_p8 = pnand %p870_p7, %p866_p2 }
  0x2a   : > { %422 = vmatpush.bf16.msra.mxu0 %v736_v10  ;;  %755 = vmatpush.bf16.msra.mxu3 %v736_v10 }
  0x2b   : > { %451 = vmatpush.bf16.msra.mxu1 %v744_v11  ;;  %763 = vmatpush.bf16.msra.mxu2 %v744_v11 }
  0x2e   : > { %423 = vmatpush.bf16.msra.mxu0 %v735_v12  ;;  %756 = vmatpush.bf16.msra.mxu3 %v735_v12 }
  0x2f   : > { %452 = vmatpush.bf16.msra.mxu1 %v743_v13  ;;  %764 = vmatpush.bf16.msra.mxu2 %v743_v13 }
  0x32   : > { %424 = vmatpush.bf16.msra.mxu0 %v734_v14  ;;  %757 = vmatpush.bf16.msra.mxu3 %v734_v14 }
  0x33   : > { %453 = vmatpush.bf16.msra.mxu1 %v742_v15  ;;  %765 = vmatpush.bf16.msra.mxu2 %v742_v15 }
  0x35   : > { %425 = vmatmul.bf16.vlgmr.msra.gmra.mxu0 %v629_v24  ;;  %435 = vmatmul.bf16.vlgmr.msra.gmra.mxu3 %v645_v26 }
  0x36   : > { %454 = vmatmul.bf16.vlgmr.msra.gmra.mxu1 %v633_v25  ;;  %469 = vmatmul.bf16.vlgmr.msra.gmra.mxu2 %v657_v27 }
  0x37   : > { %525 = vmatpush.msrb.mxu2 %v512_v48 }
  0x39   : > { %526 = vmatpush.msrb.mxu2 %v511_v49 }
  0x3b   : > { %527 = vmatpush.msrb.mxu2 %v510_v50 }
  0x3d   : > { %528 = vmatpush.msrb.mxu2 %v509_v52 }
  0x3f   : > { %529 = vmatpush.msrb.mxu2 %v508_v53 }
  0x41   : > { %530 = vmatpush.msrb.mxu2 %v507_v58 }
  0x43   : > { %531 = vmatpush.msrb.mxu2 %v506_v61 }
  0x45   : > { %430 = vmatmul.bf16.gmra.mxu0 %v637_v34  ;;  %440 = vmatmul.bf16.gmra.mxu3 %v653_v36 }
  0x46   : > { %459 = vmatmul.bf16.gmra.mxu1 %v641_v35  ;;  %532 = vmatpush.msrb.mxu2 %v505_v1 }
  0x56   : > { %464 = vmatmul.bf16.gmra.mxu1 %v649_v39 }
  0xb2   : > { %v426_v40 = vpop.f32.mrf.mxu0 }
  0xb3   : > { %v455_v41 = vpop.f32.mrf.mxu1  ;;  %v427_v59 = vadd.f32 %v816_v51, %v426_v40 }
  0xb5   : > { %v456_v2 = vadd.f32 %v455_v41, %v427_v59 }
  0xb7   : > { %v475_v8 = vmax.f32 %v456_v2, 0.0 }
  0xb8   : > { %v436_v42 = vpop.f32.mrf.mxu3 }
  0xb9   : > { %v470_v0 = vpop.f32.mrf.mxu2  ;;  %v437_v5 = vadd.f32 %v816_v51, %v436_v42  ;;  %v484_v15 = vsel %vm483_vm0, %v475_v8, 0.0 }
  0xba   : > { %v428_v43 = vpop.f32.mrf.mxu0 }
  0xbb   : > { %v457_v44 = vpop.f32.mrf.mxu1  ;;  %v429_v54 = vadd.f32 %v816_v51, %v428_v43 }
  0xbd   : > { %v458_v62 = vadd.f32 %v457_v44, %v429_v54 }
  0xbf   : > { %v476_v4 = vmax.f32 %v458_v62, 0.0 }
  0xc0   : > { %v438_v45 = vpop.f32.mrf.mxu3 }
  0xc1   : > { %v485_v12 = vsel %vm483_vm0, %v476_v4, 0.0  ;;  %v472_v20 = vpop.f32.mrf.mxu2  ;;  %v439_v21 = vadd.f32 %v816_v51, %v438_v45 }
  0xc2   : > { %v431_v46 = vpop.f32.mrf.mxu0  ;;  %v486_v19 = vadd.f32 %v485_v12, %v484_v15 }
  0xc3   : > { %v460_v47 = vpop.f32.mrf.mxu1  ;;  %v432_v60 = vadd.f32 %v816_v51, %v431_v46  ;;  %v513_v46 = vld [vmem:[%s1141_s4] sm:$0x1] }
  0xc5   : > { %v461_v3 = vadd.f32 %v460_v47, %v432_v60 }
  0xc7   : > { %v477_v9 = vmax.f32 %v461_v3, 0.0 }
  0xc8   : > { %v441_v55 = vpop.f32.mrf.mxu3 }
  0xc9   : > { %v442_v14 = vadd.f32 %v816_v51, %v441_v55  ;;  %v487_v16 = vsel %vm483_vm0, %v477_v9, 0.0 }
  0xca   : > { %v433_v56 = vpop.f32.mrf.mxu0  ;;  %v488_v24 = vadd.f32 %v487_v16, %v486_v19 }
  0xcb   : > { %v462_v57 = vpop.f32.mrf.mxu1  ;;  %v434_v63 = vadd.f32 %v816_v51, %v433_v56  ;;  %v471_v23 = vadd.f32 %v470_v0, %v442_v14 }
  0xcd   : > { %v463_v6 = vadd.f32 %v462_v57, %v434_v63  ;;  %v481_v30 = vmax.f32 %v471_v23, 0.0 }
  0xcf   : > { %v478_v13 = vmax.f32 %v463_v6, 0.0  ;;  %v495_v36 = vsel %vm483_vm0, %v481_v30, 0.0 }
  0xd0   : > { %v443_v11 = vpop.f32.mrf.mxu3 }
  0xd1   : > { %v444_v18 = vadd.f32 %v816_v51, %v443_v11  ;;  %v489_v22 = vsel %vm483_vm0, %v478_v13, 0.0 }
  0xd2   : > { %v490_v29 = vadd.f32 %v489_v22, %v488_v24 }
  0xd3   : > { %v465_v7 = vpop.f32.mrf.mxu1  ;;  %v473_v27 = vadd.f32 %v472_v20, %v444_v18 }
  0xd4   : > { %v466_v10 = vadd.f32 %v465_v7, %v437_v5 }
  0xd5   : > { %v482_v33 = vmax.f32 %v473_v27, 0.0 }
  0xd6   : > { %v479_v17 = vmax.f32 %v466_v10, 0.0 }
  0xd7   : > { %v497_v38 = vsel %vm483_vm0, %v482_v33, 0.0 }
  0xd8   : > { %v491_v26 = vsel %vm483_vm0, %v479_v17, 0.0 }
  0xd9   : > { %v492_v32 = vadd.f32 %v491_v26, %v490_v29 }
  0xdb   : > { %v467_v25 = vpop.f32.mrf.mxu1 }
  0xdc   : > { %v468_v28 = vadd.f32 %v467_v25, %v439_v21 }
  0xde   : > { %v480_v31 = vmax.f32 %v468_v28, 0.0 }
  0xe0   : > { %v493_v34 = vsel %vm483_vm0, %v480_v31, 0.0 }
  0xe1   : > { %v494_v35 = vadd.f32 %v493_v34, %v492_v32 }
  0xe3   : > { %v496_v37 = vadd.f32 %v495_v36, %v494_v35 }
  0xe5   : > { %v498_v39 = vadd.f32 %v497_v38, %v496_v37 }
  0xe7   : > { %v499_v40 = vrot.slane %v498_v39, 4 }
  0xe9   : > { %v500_v41 = vadd.f32 %v499_v40, %v498_v39 }
  0xeb   : > { %v501_v42 = vrot.slane %v500_v41, 2 }
  0xed   : > { %v502_v43 = vadd.f32 %v501_v42, %v500_v41 }
  0xef   : > { %v503_v44 = vrot.slane %v502_v43, 1 }
  0xf1   : > { %v504_v45 = vadd.f32 %v503_v44, %v502_v43 }
  0xf3   : > { %722 = vmatmul.msk.f32.vlgmr.msrb.gmra.mxu2 %vm483_vm0, %v504_v45 }
 0x176   : > { %v534_v47 = vpop.f32.mrf.mxu2 }
 0x177   : > { %v535_v48 = vadd.f32 %v534_v47, %v513_v46 }
 0x179   : > { %537 = vst [vmem:[%s231_s30] sm:$0x1] %v535_v48 }
 0x17a   : > { %874 = shalt.err (!%p871_p8)
}
 0x17b   : > { %770 = dma.vmem_to_hbm [thread:$0]  (%p984_p5), %s550_s6, 16, %s552_s7, %s539_s8  }
 0x17c PF: > { %p782_p9 = scmp.ge.s32.totalorder %s913_s21, 2  ;;  %s563_s15 = sand.u32 1, %s901_s18  }
 0x17d   : > { %s564_s16 = scalar_lea.sflag [#allocation4], %s563_s15 }
 0x17e   : > { %p777_p10 = pnand %p782_p9, %p988_p6 }
 0x180   : > { %p778_p11 = pneg %p777_p10 }
 0x182   : > { %896 = dma.done.wait (%p778_p11), %s564_s16, 16  }
 0x183   : > { %898 = vsyncadd (%p778_p11), %s564_s16, 4294967280  ;;  %p16_p12 = scmp.ge.s32.totalorder %s971_s24, 4   ;;  %s1145_s18 = smov %s905_s19 }
 0x184   : > { %s1146_s19 = smov %s909_s20  ;;  %s1147_s20 = smov %s982_s27 }
 0x185   : > { %s1148_s21 = smov %s971_s24  ;;  %18 = sbr.rel (!%p16_p12) target bundleno = 4 (0x4), region = 80 }
 0x18a   :  { %569 = vsyncpa [#allocation3], 1 }
 0x18b   :  { %571 = vsyncpa [#allocation3 + $0x1], 1 }
 0x18c   :  { %572 = vsyncpa [#allocation4], 1 }
 0x18d   :  { %574 = vsyncpa [#allocation4 + $0x1], 1 }

</bundles_post_ra>
